<compile_context>
chip_gen: v5e
topology: v5e:2x2
jax: 0.10.0
libtpu: 0.0.40
codegen_flags: <defaults>
</compile_context>

<pallas_src>
import jax
import jax.numpy as jnp
from jax import lax
from jax.experimental import pallas as pl
from jax.experimental.pallas import tpu as pltpu

_EPS = 1e-5


def _t3_kernel(x_ref, w1m_ref, w2m_ref, wsm_ref,
               s1_ref, b1_ref, s2_ref, b2_ref, ss_ref, bs_ref,
               cm_ref, selp_ref, sele_ref, out_ref):
  """One batch element per grid step.  All activations are (C, L=H*W), lane-dense.

  x_ref    : (Cin, L)        input, flattened spatial on lanes
  w1m_ref  : (Cout, 9*Cin)   conv1 weights, tap-major (dy, dx, ci)
  w2m_ref  : (Cout, 9*Cout)  conv2 weights
  wsm_ref  : (Cout, Cin)     1x1 skip conv weights (transposed)
  s*/b*    : (Cout, 1)       folded BN scale / bias
  cm_ref   : (2, L)          column-validity masks for dx=-1 / dx=+1 taps
  selp_ref : (W, Wo)         horizontal 3-tap avg (incl. 1/9) + stride-2 downselect
  sele_ref : (W, Wo)         even-column selector (skip branch)
  out_ref  : (Ho, Cout, Wo)
  """
  f32 = jnp.float32
  _, L = x_ref.shape
  W, Wo = selp_ref.shape
  Ho, Cout, _ = out_ref.shape

  x = x_ref[...].astype(f32)                  # (Cin, L)
  cm = cm_ref[...]
  cm_m1 = cm[0:1, :]                          # valid where x-1 >= 0
  cm_p1 = cm[1:2, :]                          # valid where x+1 <  W

  def shift(v, o):
    # out[:, p] = v[:, p + o], zero-filled outside [0, L).  Static lane slice + concat.
    c = v.shape[0]
    if o == 0:
      return v
    if o > 0:
      return jnp.concatenate([v[:, o:], jnp.zeros((c, o), f32)], axis=1)
    return jnp.concatenate([jnp.zeros((c, -o), f32), v[:, :L + o]], axis=1)

  def im2col(v):
    # (C, L) -> (9*C, L); zero-fill shifts handle row padding exactly, column masks
    # zero the taps that would wrap across a row boundary.
    taps = []
    for dy in (-1, 0, 1):
      for dx in (-1, 0, 1):
        t = shift(v, dy * W + dx)
        if dx == -1:
          t = t * cm_m1
        elif dx == 1:
          t = t * cm_p1
        taps.append(t)
    return jnp.concatenate(taps, axis=0)

  # ---- conv1 (3x3, s1, p1) + BN1 + ReLU : one MXU push, K = 9*Cin -------------------
  a1 = jnp.dot(w1m_ref[...], im2col(x), preferred_element_type=f32)      # (Cout, L)
  a1 = jnp.maximum(a1 * s1_ref[...] + b1_ref[...], 0.0)

  # ---- conv2 (3x3, s1, p1) + BN2 (Identity act) : one MXU push, K = 9*Cout ----------
  a2 = jnp.dot(w2m_ref[...], im2col(a1), preferred_element_type=f32)     # (Cout, L)
  a2 = a2 * s2_ref[...] + b2_ref[...]

  # ---- AvgPool 3x3 s2 p1 (count_include_pad): vertical 3-tap sum via shifts ---------
  sy = a2 + shift(a2, -W) + shift(a2, W)                                 # (Cout, L)

  # ---- skip: 1x1 conv + BN_s at full resolution (downselected with the pool) --------
  sk = jnp.dot(wsm_ref[...], x, preferred_element_type=f32)              # (Cout, L)
  sk = sk * ss_ref[...] + bs_ref[...]

  # ---- stride-2 row downselect (static lane-chunk slices, i-major / channel-minor) --
  sy_rows = jnp.concatenate([sy[:, 2 * i * W: 2 * i * W + W] for i in range(Ho)], axis=0)
  sk_rows = jnp.concatenate([sk[:, 2 * i * W: 2 * i * W + W] for i in range(Ho)], axis=0)

  # ---- horizontal 3-tap avg + stride-2 col downselect / even-col pick: one matmul ---
  res = (jnp.dot(sy_rows, selp_ref[...], preferred_element_type=f32) +
         jnp.dot(sk_rows, sele_ref[...], preferred_element_type=f32))    # (Ho*Cout, Wo)

  out_ref[...] = res.reshape(Ho, Cout, Wo).astype(out_ref.dtype)


def _fold_bn(gamma, beta, mean, var):
  scale = gamma / jnp.sqrt(var + _EPS)
  bias = beta - mean * scale
  return scale.astype(jnp.float32), bias.astype(jnp.float32)


@jax.jit
def t3_forward(x_nchw, params):
  """T3 forward. Input NCHW (like PyTorch), output NCHW (N, Cout, H//2, W//2)."""
  x_nchw = x_nchw.astype(jnp.float32)
  N, Cin, H, W = x_nchw.shape
  Cout = params["w1"].shape[-1]
  assert H % 2 == 0 and W % 2 == 0, "even spatial dims assumed"
  Ho, Wo, L = H // 2, W // 2, H * W

  # free reshape: NCHW -> (N, C, H*W), lane axis = flattened spatial
  x_flat = x_nchw.reshape(N, Cin, L)

  # conv weights flattened to (Cout, 9*C), tap order (dy, dx, ci) matching im2col
  w1m = jnp.transpose(params["w1"], (3, 0, 1, 2)).reshape(Cout, 9 * Cin).astype(jnp.float32)
  w2m = jnp.transpose(params["w2"], (3, 0, 1, 2)).reshape(Cout, 9 * Cout).astype(jnp.float32)
  wsm = jnp.transpose(params["ws"], (1, 0)).astype(jnp.float32)          # (Cout, Cin)

  s1, b1 = _fold_bn(params["g1"], params["be1"], params["m1"], params["v1"])
  s2, b2 = _fold_bn(params["g2"], params["be2"], params["m2"], params["v2"])
  ss, bs = _fold_bn(params["gs"], params["bes"], params["ms"], params["vs"])
  s1, b1, s2, b2, ss, bs = (v.reshape(Cout, 1) for v in (s1, b1, s2, b2, ss, bs))

  # column-boundary masks for the dx=-1 / dx=+1 taps (flat layout wraps rows)
  xmod = jnp.arange(L, dtype=jnp.int32) % W
  cmask = jnp.stack([(xmod != 0), (xmod != W - 1)], axis=0).astype(jnp.float32)   # (2, L)

  # horizontal pooling (3-tap avg, stride 2, incl. 1/9) and even-column selection
  xs = jnp.arange(W, dtype=jnp.int32)[:, None]
  js = jnp.arange(Wo, dtype=jnp.int32)[None, :]
  selp = (jnp.abs(xs - 2 * js) <= 1).astype(jnp.float32) / 9.0           # (W, Wo)
  sele = (xs == 2 * js).astype(jnp.float32)                              # (W, Wo)

  full = lambda a: pl.BlockSpec(a.shape, lambda b: (0,) * a.ndim)

  out = pl.pallas_call(
      _t3_kernel,
      out_shape=jax.ShapeDtypeStruct((N, Ho, Cout, Wo), jnp.float32),
      grid=(N,),
      in_specs=[
          pl.BlockSpec((None, Cin, L), lambda b: (b, 0, 0)),
          full(w1m), full(w2m), full(wsm),
          full(s1), full(b1), full(s2), full(b2), full(ss), full(bs),
          full(cmask), full(selp), full(sele),
      ],
      out_specs=pl.BlockSpec((None, Ho, Cout, Wo), lambda b: (b, 0, 0, 0)),
      compiler_params=pltpu.CompilerParams(
          dimension_semantics=("parallel",),
          vmem_limit_bytes=32 * 1024 * 1024),
  )(x_flat, w1m, w2m, wsm, s1, b1, s2, b2, ss, bs, cmask, selp, sele)

  # (N, Ho, Cout, Wo) -> NCHW
  return jnp.transpose(out, (0, 2, 1, 3))


# ----------------------------- pure-JAX reference -----------------------------------
def t3_reference(x_nchw, params):
  x = jnp.transpose(x_nchw, (0, 2, 3, 1)).astype(jnp.float32)            # NHWC

  def conv(v, w, stride, pad):
    return lax.conv_general_dilated(
        v, w, (stride, stride), [(pad, pad), (pad, pad)],
        dimension_numbers=("NHWC", "HWIO", "NHWC"))

  s1, b1 = _fold_bn(params["g1"], params["be1"], params["m1"], params["v1"])
  s2, b2 = _fold_bn(params["g2"], params["be2"], params["m2"], params["v2"])
  ss, bs = _fold_bn(params["gs"], params["bes"], params["ms"], params["vs"])

  a = jax.nn.relu(conv(x, params["w1"], 1, 1) * s1 + b1)
  a = conv(a, params["w2"], 1, 1) * s2 + b2
  ap = jnp.pad(a, ((0, 0), (1, 1), (1, 1), (0, 0)))
  pooled = lax.reduce_window(ap, 0.0, lax.add, (1, 3, 3, 1), (1, 2, 2, 1), "VALID") / 9.0
  skip = conv(x, params["ws"][None, None], 2, 0) * ss + bs
  return jnp.transpose(pooled + skip, (0, 3, 1, 2))


def make_params(key, idim, odim):
  ks = jax.random.split(key, 16)
  n = lambda k, s, scale=0.1: scale * jax.random.normal(k, s, jnp.float32)
  return {
      "w1": n(ks[0], (3, 3, idim, odim)),
      "w2": n(ks[1], (3, 3, odim, odim)),
      "ws": n(ks[2], (idim, odim)),
      # BN1
      "g1": 1.0 + n(ks[3], (odim,)), "be1": n(ks[4], (odim,)),
      "m1": n(ks[5], (odim,)), "v1": 1.0 + 0.5 * jax.random.uniform(ks[6], (odim,)),
      # BN2
      "g2": 1.0 + n(ks[7], (odim,)), "be2": n(ks[8], (odim,)),
      "m2": n(ks[9], (odim,)), "v2": 1.0 + 0.5 * jax.random.uniform(ks[10], (odim,)),
      # BN skip
      "gs": 1.0 + n(ks[11], (odim,)), "bes": n(ks[12], (odim,)),
      "ms": n(ks[13], (odim,)), "vs": 1.0 + 0.5 * jax.random.uniform(ks[14], (odim,)),
  }


if __name__ == "__main__":
  key = jax.random.PRNGKey(0)
  k_x, k_p = jax.random.split(key)

  N, idim, odim, H, W = 2, 4, 8, 16, 16
  x = jax.random.normal(k_x, (N, idim, H, W), jnp.float32)
  params = make_params(k_p, idim, odim)

  out = jax.block_until_ready(t3_forward(x, params))
  ref = jax.block_until_ready(t3_reference(x, params))

  assert out.shape == (N, odim, H // 2, W // 2), out.shape
  err = float(jnp.max(jnp.abs(out - ref)))
  assert jnp.allclose(out, ref, rtol=1e-4, atol=1e-4), err

  print("KERNEL_OK")
</pallas_src>

<mosaic_0001>
module attributes {stable_mosaic.version = 11 : i64} {
  func.func @_t3_kernel(%arg0: i32, %arg1: memref<1x4x256xf32, #tpu.memory_space<vmem>>, %arg2: memref<8x36xf32, #tpu.memory_space<vmem>>, %arg3: memref<8x72xf32, #tpu.memory_space<vmem>>, %arg4: memref<8x4xf32, #tpu.memory_space<vmem>>, %arg5: memref<8x1xf32, #tpu.memory_space<vmem>>, %arg6: memref<8x1xf32, #tpu.memory_space<vmem>>, %arg7: memref<8x1xf32, #tpu.memory_space<vmem>>, %arg8: memref<8x1xf32, #tpu.memory_space<vmem>>, %arg9: memref<8x1xf32, #tpu.memory_space<vmem>>, %arg10: memref<8x1xf32, #tpu.memory_space<vmem>>, %arg11: memref<2x256xf32, #tpu.memory_space<vmem>>, %arg12: memref<16x8xf32, #tpu.memory_space<vmem>>, %arg13: memref<16x8xf32, #tpu.memory_space<vmem>>, %arg14: memref<1x8x8x8xf32, #tpu.memory_space<vmem>>) attributes {dimension_semantics = [#tpu.dimension_semantics<parallel>], iteration_bounds = array<i64: 2>, scalar_prefetch = 0 : i64, scratch_operands = 0 : i64, tpu.core_type = #tpu.core_type<tc>, window_params = [{transform_indices = @transform_0, window_bounds = array<i64: 1, 4, 256>}, {pipeline_mode = #tpu.pipeline_mode<synchronous>, transform_indices = @transform_1, window_bounds = array<i64: 8, 36>}, {pipeline_mode = #tpu.pipeline_mode<synchronous>, transform_indices = @transform_2, window_bounds = array<i64: 8, 72>}, {pipeline_mode = #tpu.pipeline_mode<synchronous>, transform_indices = @transform_3, window_bounds = array<i64: 8, 4>}, {pipeline_mode = #tpu.pipeline_mode<synchronous>, transform_indices = @transform_4, window_bounds = array<i64: 8, 1>}, {pipeline_mode = #tpu.pipeline_mode<synchronous>, transform_indices = @transform_5, window_bounds = array<i64: 8, 1>}, {pipeline_mode = #tpu.pipeline_mode<synchronous>, transform_indices = @transform_6, window_bounds = array<i64: 8, 1>}, {pipeline_mode = #tpu.pipeline_mode<synchronous>, transform_indices = @transform_7, window_bounds = array<i64: 8, 1>}, {pipeline_mode = #tpu.pipeline_mode<synchronous>, transform_indices = @transform_8, window_bounds = array<i64: 8, 1>}, {pipeline_mode = #tpu.pipeline_mode<synchronous>, transform_indices = @transform_9, window_bounds = array<i64: 8, 1>}, {pipeline_mode = #tpu.pipeline_mode<synchronous>, transform_indices = @transform_10, window_bounds = array<i64: 2, 256>}, {pipeline_mode = #tpu.pipeline_mode<synchronous>, transform_indices = @transform_11, window_bounds = array<i64: 16, 8>}, {pipeline_mode = #tpu.pipeline_mode<synchronous>, transform_indices = @transform_12, window_bounds = array<i64: 16, 8>}, {transform_indices = @transform_13, window_bounds = array<i64: 1, 8, 8, 8>}]} {
    %c0 = arith.constant 0 : index
    %c0_0 = arith.constant 0 : index
    %c0_1 = arith.constant 0 : index
    %0 = vector.load %arg1[%c0, %c0_0, %c0_1] : memref<1x4x256xf32, #tpu.memory_space<vmem>>, vector<1x4x256xf32>
    %1 = vector.shape_cast %0 : vector<1x4x256xf32> to vector<4x256xf32>
    %c0_2 = arith.constant 0 : index
    %c0_3 = arith.constant 0 : index
    %2 = vector.load %arg11[%c0_2, %c0_3] : memref<2x256xf32, #tpu.memory_space<vmem>>, vector<2x256xf32>
    %3 = vector.extract_strided_slice %2 {offsets = [0, 0], sizes = [1, 256], strides = [1, 1]} : vector<2x256xf32> to vector<1x256xf32>
    %4 = vector.extract_strided_slice %2 {offsets = [1, 0], sizes = [1, 256], strides = [1, 1]} : vector<2x256xf32> to vector<1x256xf32>
    %c0_4 = arith.constant 0 : index
    %c0_5 = arith.constant 0 : index
    %5 = vector.load %arg2[%c0_4, %c0_5] : memref<8x36xf32, #tpu.memory_space<vmem>>, vector<8x36xf32>
    %cst = arith.constant 0.000000e+00 : f32
    %6 = vector.broadcast %cst : f32 to vector<4x17xf32>
    %7 = vector.extract_strided_slice %1 {offsets = [0, 0], sizes = [4, 239], strides = [1, 1]} : vector<4x256xf32> to vector<4x239xf32>
    %8 = tpu.concatenate %6, %7 in 1 : vector<4x17xf32>, vector<4x239xf32> -> vector<4x256xf32>
    %9 = vector.broadcast %3 : vector<1x256xf32> to vector<4x256xf32>
    %10 = arith.mulf %8, %9 : vector<4x256xf32>
    %cst_6 = arith.constant 0.000000e+00 : f32
    %11 = vector.broadcast %cst_6 : f32 to vector<4x16xf32>
    %12 = vector.extract_strided_slice %1 {offsets = [0, 0], sizes = [4, 240], strides = [1, 1]} : vector<4x256xf32> to vector<4x240xf32>
    %13 = tpu.concatenate %11, %12 in 1 : vector<4x16xf32>, vector<4x240xf32> -> vector<4x256xf32>
    %cst_7 = arith.constant 0.000000e+00 : f32
    %14 = vector.broadcast %cst_7 : f32 to vector<4x15xf32>
    %15 = vector.extract_strided_slice %1 {offsets = [0, 0], sizes = [4, 241], strides = [1, 1]} : vector<4x256xf32> to vector<4x241xf32>
    %16 = tpu.concatenate %14, %15 in 1 : vector<4x15xf32>, vector<4x241xf32> -> vector<4x256xf32>
    %17 = vector.broadcast %4 : vector<1x256xf32> to vector<4x256xf32>
    %18 = arith.mulf %16, %17 : vector<4x256xf32>
    %cst_8 = arith.constant 0.000000e+00 : f32
    %19 = vector.broadcast %cst_8 : f32 to vector<4x1xf32>
    %20 = vector.extract_strided_slice %1 {offsets = [0, 0], sizes = [4, 255], strides = [1, 1]} : vector<4x256xf32> to vector<4x255xf32>
    %21 = tpu.concatenate %19, %20 in 1 : vector<4x1xf32>, vector<4x255xf32> -> vector<4x256xf32>
    %22 = vector.broadcast %3 : vector<1x256xf32> to vector<4x256xf32>
    %23 = arith.mulf %21, %22 : vector<4x256xf32>
    %24 = vector.extract_strided_slice %1 {offsets = [0, 1], sizes = [4, 255], strides = [1, 1]} : vector<4x256xf32> to vector<4x255xf32>
    %cst_9 = arith.constant 0.000000e+00 : f32
    %25 = vector.broadcast %cst_9 : f32 to vector<4x1xf32>
    %26 = tpu.concatenate %24, %25 in 1 : vector<4x255xf32>, vector<4x1xf32> -> vector<4x256xf32>
    %27 = vector.broadcast %4 : vector<1x256xf32> to vector<4x256xf32>
    %28 = arith.mulf %26, %27 : vector<4x256xf32>
    %29 = vector.extract_strided_slice %1 {offsets = [0, 15], sizes = [4, 241], strides = [1, 1]} : vector<4x256xf32> to vector<4x241xf32>
    %cst_10 = arith.constant 0.000000e+00 : f32
    %30 = vector.broadcast %cst_10 : f32 to vector<4x15xf32>
    %31 = tpu.concatenate %29, %30 in 1 : vector<4x241xf32>, vector<4x15xf32> -> vector<4x256xf32>
    %32 = vector.broadcast %3 : vector<1x256xf32> to vector<4x256xf32>
    %33 = arith.mulf %31, %32 : vector<4x256xf32>
    %34 = vector.extract_strided_slice %1 {offsets = [0, 16], sizes = [4, 240], strides = [1, 1]} : vector<4x256xf32> to vector<4x240xf32>
    %cst_11 = arith.constant 0.000000e+00 : f32
    %35 = vector.broadcast %cst_11 : f32 to vector<4x16xf32>
    %36 = tpu.concatenate %34, %35 in 1 : vector<4x240xf32>, vector<4x16xf32> -> vector<4x256xf32>
    %37 = vector.extract_strided_slice %1 {offsets = [0, 17], sizes = [4, 239], strides = [1, 1]} : vector<4x256xf32> to vector<4x239xf32>
    %cst_12 = arith.constant 0.000000e+00 : f32
    %38 = vector.broadcast %cst_12 : f32 to vector<4x17xf32>
    %39 = tpu.concatenate %37, %38 in 1 : vector<4x239xf32>, vector<4x17xf32> -> vector<4x256xf32>
    %40 = vector.broadcast %4 : vector<1x256xf32> to vector<4x256xf32>
    %41 = arith.mulf %39, %40 : vector<4x256xf32>
    %42 = tpu.concatenate %10, %13, %18, %23, %1, %28, %33, %36, %41 in 0 : vector<4x256xf32>, vector<4x256xf32>, vector<4x256xf32>, vector<4x256xf32>, vector<4x256xf32>, vector<4x256xf32>, vector<4x256xf32>, vector<4x256xf32>, vector<4x256xf32> -> vector<36x256xf32>
    %cst_13 = arith.constant dense<0.000000e+00> : vector<8x256xf32>
    %43 = tpu.matmul %5, %42, %cst_13 {dimension_numbers = #tpu.dot_dimension_numbers<[1], [0], [0], [1], [0, 0, 1, 1], [], []>} : vector<8x36xf32>, vector<36x256xf32>, vector<8x256xf32> -> vector<8x256xf32>
    %c0_14 = arith.constant 0 : index
    %c0_15 = arith.constant 0 : index
    %44 = vector.load %arg5[%c0_14, %c0_15] : memref<8x1xf32, #tpu.memory_space<vmem>>, vector<8x1xf32>
    %45 = vector.broadcast %44 : vector<8x1xf32> to vector<8x256xf32>
    %46 = arith.mulf %43, %45 : vector<8x256xf32>
    %c0_16 = arith.constant 0 : index
    %c0_17 = arith.constant 0 : index
    %47 = vector.load %arg6[%c0_16, %c0_17] : memref<8x1xf32, #tpu.memory_space<vmem>>, vector<8x1xf32>
    %48 = vector.broadcast %47 : vector<8x1xf32> to vector<8x256xf32>
    %49 = arith.addf %46, %48 : vector<8x256xf32>
    %cst_18 = arith.constant 0.000000e+00 : f32
    %50 = vector.broadcast %cst_18 : f32 to vector<8x256xf32>
    %51 = arith.maximumf %49, %50 : vector<8x256xf32>
    %c0_19 = arith.constant 0 : index
    %c0_20 = arith.constant 0 : index
    %52 = vector.load %arg3[%c0_19, %c0_20] : memref<8x72xf32, #tpu.memory_space<vmem>>, vector<8x72xf32>
    %cst_21 = arith.constant 0.000000e+00 : f32
    %53 = vector.broadcast %cst_21 : f32 to vector<8x17xf32>
    %54 = vector.extract_strided_slice %51 {offsets = [0, 0], sizes = [8, 239], strides = [1, 1]} : vector<8x256xf32> to vector<8x239xf32>
    %55 = tpu.concatenate %53, %54 in 1 : vector<8x17xf32>, vector<8x239xf32> -> vector<8x256xf32>
    %56 = vector.broadcast %3 : vector<1x256xf32> to vector<8x256xf32>
    %57 = arith.mulf %55, %56 : vector<8x256xf32>
    %cst_22 = arith.constant 0.000000e+00 : f32
    %58 = vector.broadcast %cst_22 : f32 to vector<8x16xf32>
    %59 = vector.extract_strided_slice %51 {offsets = [0, 0], sizes = [8, 240], strides = [1, 1]} : vector<8x256xf32> to vector<8x240xf32>
    %60 = tpu.concatenate %58, %59 in 1 : vector<8x16xf32>, vector<8x240xf32> -> vector<8x256xf32>
    %cst_23 = arith.constant 0.000000e+00 : f32
    %61 = vector.broadcast %cst_23 : f32 to vector<8x15xf32>
    %62 = vector.extract_strided_slice %51 {offsets = [0, 0], sizes = [8, 241], strides = [1, 1]} : vector<8x256xf32> to vector<8x241xf32>
    %63 = tpu.concatenate %61, %62 in 1 : vector<8x15xf32>, vector<8x241xf32> -> vector<8x256xf32>
    %64 = vector.broadcast %4 : vector<1x256xf32> to vector<8x256xf32>
    %65 = arith.mulf %63, %64 : vector<8x256xf32>
    %cst_24 = arith.constant 0.000000e+00 : f32
    %66 = vector.broadcast %cst_24 : f32 to vector<8x1xf32>
    %67 = vector.extract_strided_slice %51 {offsets = [0, 0], sizes = [8, 255], strides = [1, 1]} : vector<8x256xf32> to vector<8x255xf32>
    %68 = tpu.concatenate %66, %67 in 1 : vector<8x1xf32>, vector<8x255xf32> -> vector<8x256xf32>
    %69 = vector.broadcast %3 : vector<1x256xf32> to vector<8x256xf32>
    %70 = arith.mulf %68, %69 : vector<8x256xf32>
    %71 = vector.extract_strided_slice %51 {offsets = [0, 1], sizes = [8, 255], strides = [1, 1]} : vector<8x256xf32> to vector<8x255xf32>
    %cst_25 = arith.constant 0.000000e+00 : f32
    %72 = vector.broadcast %cst_25 : f32 to vector<8x1xf32>
    %73 = tpu.concatenate %71, %72 in 1 : vector<8x255xf32>, vector<8x1xf32> -> vector<8x256xf32>
    %74 = vector.broadcast %4 : vector<1x256xf32> to vector<8x256xf32>
    %75 = arith.mulf %73, %74 : vector<8x256xf32>
    %76 = vector.extract_strided_slice %51 {offsets = [0, 15], sizes = [8, 241], strides = [1, 1]} : vector<8x256xf32> to vector<8x241xf32>
    %cst_26 = arith.constant 0.000000e+00 : f32
    %77 = vector.broadcast %cst_26 : f32 to vector<8x15xf32>
    %78 = tpu.concatenate %76, %77 in 1 : vector<8x241xf32>, vector<8x15xf32> -> vector<8x256xf32>
    %79 = vector.broadcast %3 : vector<1x256xf32> to vector<8x256xf32>
    %80 = arith.mulf %78, %79 : vector<8x256xf32>
    %81 = vector.extract_strided_slice %51 {offsets = [0, 16], sizes = [8, 240], strides = [1, 1]} : vector<8x256xf32> to vector<8x240xf32>
    %cst_27 = arith.constant 0.000000e+00 : f32
    %82 = vector.broadcast %cst_27 : f32 to vector<8x16xf32>
    %83 = tpu.concatenate %81, %82 in 1 : vector<8x240xf32>, vector<8x16xf32> -> vector<8x256xf32>
    %84 = vector.extract_strided_slice %51 {offsets = [0, 17], sizes = [8, 239], strides = [1, 1]} : vector<8x256xf32> to vector<8x239xf32>
    %cst_28 = arith.constant 0.000000e+00 : f32
    %85 = vector.broadcast %cst_28 : f32 to vector<8x17xf32>
    %86 = tpu.concatenate %84, %85 in 1 : vector<8x239xf32>, vector<8x17xf32> -> vector<8x256xf32>
    %87 = vector.broadcast %4 : vector<1x256xf32> to vector<8x256xf32>
    %88 = arith.mulf %86, %87 : vector<8x256xf32>
    %89 = tpu.concatenate %57, %60, %65, %70, %51, %75, %80, %83, %88 in 0 : vector<8x256xf32>, vector<8x256xf32>, vector<8x256xf32>, vector<8x256xf32>, vector<8x256xf32>, vector<8x256xf32>, vector<8x256xf32>, vector<8x256xf32>, vector<8x256xf32> -> vector<72x256xf32>
    %cst_29 = arith.constant dense<0.000000e+00> : vector<8x256xf32>
    %90 = tpu.matmul %52, %89, %cst_29 {dimension_numbers = #tpu.dot_dimension_numbers<[1], [0], [0], [1], [0, 0, 1, 1], [], []>} : vector<8x72xf32>, vector<72x256xf32>, vector<8x256xf32> -> vector<8x256xf32>
    %c0_30 = arith.constant 0 : index
    %c0_31 = arith.constant 0 : index
    %91 = vector.load %arg7[%c0_30, %c0_31] : memref<8x1xf32, #tpu.memory_space<vmem>>, vector<8x1xf32>
    %92 = vector.broadcast %91 : vector<8x1xf32> to vector<8x256xf32>
    %93 = arith.mulf %90, %92 : vector<8x256xf32>
    %c0_32 = arith.constant 0 : index
    %c0_33 = arith.constant 0 : index
    %94 = vector.load %arg8[%c0_32, %c0_33] : memref<8x1xf32, #tpu.memory_space<vmem>>, vector<8x1xf32>
    %95 = vector.broadcast %94 : vector<8x1xf32> to vector<8x256xf32>
    %96 = arith.addf %93, %95 : vector<8x256xf32>
    %cst_34 = arith.constant 0.000000e+00 : f32
    %97 = vector.broadcast %cst_34 : f32 to vector<8x16xf32>
    %98 = vector.extract_strided_slice %96 {offsets = [0, 0], sizes = [8, 240], strides = [1, 1]} : vector<8x256xf32> to vector<8x240xf32>
    %99 = tpu.concatenate %97, %98 in 1 : vector<8x16xf32>, vector<8x240xf32> -> vector<8x256xf32>
    %100 = arith.addf %96, %99 : vector<8x256xf32>
    %101 = vector.extract_strided_slice %96 {offsets = [0, 16], sizes = [8, 240], strides = [1, 1]} : vector<8x256xf32> to vector<8x240xf32>
    %cst_35 = arith.constant 0.000000e+00 : f32
    %102 = vector.broadcast %cst_35 : f32 to vector<8x16xf32>
    %103 = tpu.concatenate %101, %102 in 1 : vector<8x240xf32>, vector<8x16xf32> -> vector<8x256xf32>
    %104 = arith.addf %100, %103 : vector<8x256xf32>
    %c0_36 = arith.constant 0 : index
    %c0_37 = arith.constant 0 : index
    %105 = vector.load %arg4[%c0_36, %c0_37] : memref<8x4xf32, #tpu.memory_space<vmem>>, vector<8x4xf32>
    %cst_38 = arith.constant dense<0.000000e+00> : vector<8x256xf32>
    %106 = tpu.matmul %105, %1, %cst_38 {dimension_numbers = #tpu.dot_dimension_numbers<[1], [0], [0], [1], [0, 0, 1, 1], [], []>} : vector<8x4xf32>, vector<4x256xf32>, vector<8x256xf32> -> vector<8x256xf32>
    %c0_39 = arith.constant 0 : index
    %c0_40 = arith.constant 0 : index
    %107 = vector.load %arg9[%c0_39, %c0_40] : memref<8x1xf32, #tpu.memory_space<vmem>>, vector<8x1xf32>
    %108 = vector.broadcast %107 : vector<8x1xf32> to vector<8x256xf32>
    %109 = arith.mulf %106, %108 : vector<8x256xf32>
    %c0_41 = arith.constant 0 : index
    %c0_42 = arith.constant 0 : index
    %110 = vector.load %arg10[%c0_41, %c0_42] : memref<8x1xf32, #tpu.memory_space<vmem>>, vector<8x1xf32>
    %111 = vector.broadcast %110 : vector<8x1xf32> to vector<8x256xf32>
    %112 = arith.addf %109, %111 : vector<8x256xf32>
    %113 = vector.extract_strided_slice %104 {offsets = [0, 0], sizes = [8, 16], strides = [1, 1]} : vector<8x256xf32> to vector<8x16xf32>
    %114 = vector.extract_strided_slice %104 {offsets = [0, 32], sizes = [8, 16], strides = [1, 1]} : vector<8x256xf32> to vector<8x16xf32>
    %115 = vector.extract_strided_slice %104 {offsets = [0, 64], sizes = [8, 16], strides = [1, 1]} : vector<8x256xf32> to vector<8x16xf32>
    %116 = vector.extract_strided_slice %104 {offsets = [0, 96], sizes = [8, 16], strides = [1, 1]} : vector<8x256xf32> to vector<8x16xf32>
    %117 = vector.extract_strided_slice %104 {offsets = [0, 128], sizes = [8, 16], strides = [1, 1]} : vector<8x256xf32> to vector<8x16xf32>
    %118 = vector.extract_strided_slice %104 {offsets = [0, 160], sizes = [8, 16], strides = [1, 1]} : vector<8x256xf32> to vector<8x16xf32>
    %119 = vector.extract_strided_slice %104 {offsets = [0, 192], sizes = [8, 16], strides = [1, 1]} : vector<8x256xf32> to vector<8x16xf32>
    %120 = vector.extract_strided_slice %104 {offsets = [0, 224], sizes = [8, 16], strides = [1, 1]} : vector<8x256xf32> to vector<8x16xf32>
    %121 = tpu.concatenate %113, %114, %115, %116, %117, %118, %119, %120 in 0 : vector<8x16xf32>, vector<8x16xf32>, vector<8x16xf32>, vector<8x16xf32>, vector<8x16xf32>, vector<8x16xf32>, vector<8x16xf32>, vector<8x16xf32> -> vector<64x16xf32>
    %122 = vector.extract_strided_slice %112 {offsets = [0, 0], sizes = [8, 16], strides = [1, 1]} : vector<8x256xf32> to vector<8x16xf32>
    %123 = vector.extract_strided_slice %112 {offsets = [0, 32], sizes = [8, 16], strides = [1, 1]} : vector<8x256xf32> to vector<8x16xf32>
    %124 = vector.extract_strided_slice %112 {offsets = [0, 64], sizes = [8, 16], strides = [1, 1]} : vector<8x256xf32> to vector<8x16xf32>
    %125 = vector.extract_strided_slice %112 {offsets = [0, 96], sizes = [8, 16], strides = [1, 1]} : vector<8x256xf32> to vector<8x16xf32>
    %126 = vector.extract_strided_slice %112 {offsets = [0, 128], sizes = [8, 16], strides = [1, 1]} : vector<8x256xf32> to vector<8x16xf32>
    %127 = vector.extract_strided_slice %112 {offsets = [0, 160], sizes = [8, 16], strides = [1, 1]} : vector<8x256xf32> to vector<8x16xf32>
    %128 = vector.extract_strided_slice %112 {offsets = [0, 192], sizes = [8, 16], strides = [1, 1]} : vector<8x256xf32> to vector<8x16xf32>
    %129 = vector.extract_strided_slice %112 {offsets = [0, 224], sizes = [8, 16], strides = [1, 1]} : vector<8x256xf32> to vector<8x16xf32>
    %130 = tpu.concatenate %122, %123, %124, %125, %126, %127, %128, %129 in 0 : vector<8x16xf32>, vector<8x16xf32>, vector<8x16xf32>, vector<8x16xf32>, vector<8x16xf32>, vector<8x16xf32>, vector<8x16xf32>, vector<8x16xf32> -> vector<64x16xf32>
    %c0_43 = arith.constant 0 : index
    %c0_44 = arith.constant 0 : index
    %131 = vector.load %arg12[%c0_43, %c0_44] : memref<16x8xf32, #tpu.memory_space<vmem>>, vector<16x8xf32>
    %cst_45 = arith.constant dense<0.000000e+00> : vector<64x8xf32>
    %132 = tpu.matmul %121, %131, %cst_45 {dimension_numbers = #tpu.dot_dimension_numbers<[1], [0], [0], [1], [0, 0, 1, 1], [], []>} : vector<64x16xf32>, vector<16x8xf32>, vector<64x8xf32> -> vector<64x8xf32>
    %c0_46 = arith.constant 0 : index
    %c0_47 = arith.constant 0 : index
    %133 = vector.load %arg13[%c0_46, %c0_47] : memref<16x8xf32, #tpu.memory_space<vmem>>, vector<16x8xf32>
    %cst_48 = arith.constant dense<0.000000e+00> : vector<64x8xf32>
    %134 = tpu.matmul %130, %133, %cst_48 {dimension_numbers = #tpu.dot_dimension_numbers<[1], [0], [0], [1], [0, 0, 1, 1], [], []>} : vector<64x16xf32>, vector<16x8xf32>, vector<64x8xf32> -> vector<64x8xf32>
    %135 = arith.addf %132, %134 : vector<64x8xf32>
    %136 = vector.shape_cast %135 : vector<64x8xf32> to vector<8x8x8xf32>
    %c0_49 = arith.constant 0 : index
    %c0_50 = arith.constant 0 : index
    %c0_51 = arith.constant 0 : index
    %c0_52 = arith.constant 0 : index
    %137 = vector.load %arg14[%c0_49, %c0_50, %c0_51, %c0_52] : memref<1x8x8x8xf32, #tpu.memory_space<vmem>>, vector<1x8x8x8xf32>
    %138 = vector.shape_cast %137 : vector<1x8x8x8xf32> to vector<8x8x8xf32>
    %139 = vector.shape_cast %136 : vector<8x8x8xf32> to vector<1x8x8x8xf32>
    tpu.vector_store %arg14[%c0_49, %c0_50, %c0_51, %c0_52], %139 {strides = array<i32>} : memref<1x8x8x8xf32, #tpu.memory_space<vmem>>, vector<1x8x8x8xf32>,
    return
  }
  func.func @transform_0(%arg0: i32) -> (i32, i32, i32) {
    %c0_i32 = arith.constant 0 : i32
    %c0_i32_0 = arith.constant 0 : i32
    %c0_i32_1 = arith.constant 0 : i32
    return %arg0, %c0_i32, %c0_i32_0 : i32, i32, i32
  }
  func.func @transform_1(%arg0: i32) -> (i32, i32) {
    %c0_i32 = arith.constant 0 : i32
    %c0_i32_0 = arith.constant 0 : i32
    %c0_i32_1 = arith.constant 0 : i32
    return %c0_i32, %c0_i32_0 : i32, i32
  }
  func.func @transform_2(%arg0: i32) -> (i32, i32) {
    %c0_i32 = arith.constant 0 : i32
    %c0_i32_0 = arith.constant 0 : i32
    %c0_i32_1 = arith.constant 0 : i32
    return %c0_i32, %c0_i32_0 : i32, i32
  }
  func.func @transform_3(%arg0: i32) -> (i32, i32) {
    %c0_i32 = arith.constant 0 : i32
    %c0_i32_0 = arith.constant 0 : i32
    %c0_i32_1 = arith.constant 0 : i32
    return %c0_i32, %c0_i32_0 : i32, i32
  }
  func.func @transform_4(%arg0: i32) -> (i32, i32) {
    %c0_i32 = arith.constant 0 : i32
    %c0_i32_0 = arith.constant 0 : i32
    %c0_i32_1 = arith.constant 0 : i32
    return %c0_i32, %c0_i32_0 : i32, i32
  }
  func.func @transform_5(%arg0: i32) -> (i32, i32) {
    %c0_i32 = arith.constant 0 : i32
    %c0_i32_0 = arith.constant 0 : i32
    %c0_i32_1 = arith.constant 0 : i32
    return %c0_i32, %c0_i32_0 : i32, i32
  }
  func.func @transform_6(%arg0: i32) -> (i32, i32) {
    %c0_i32 = arith.constant 0 : i32
    %c0_i32_0 = arith.constant 0 : i32
    %c0_i32_1 = arith.constant 0 : i32
    return %c0_i32, %c0_i32_0 : i32, i32
  }
  func.func @transform_7(%arg0: i32) -> (i32, i32) {
    %c0_i32 = arith.constant 0 : i32
    %c0_i32_0 = arith.constant 0 : i32
    %c0_i32_1 = arith.constant 0 : i32
    return %c0_i32, %c0_i32_0 : i32, i32
  }
  func.func @transform_8(%arg0: i32) -> (i32, i32) {
    %c0_i32 = arith.constant 0 : i32
    %c0_i32_0 = arith.constant 0 : i32
    %c0_i32_1 = arith.constant 0 : i32
    return %c0_i32, %c0_i32_0 : i32, i32
  }
  func.func @transform_9(%arg0: i32) -> (i32, i32) {
    %c0_i32 = arith.constant 0 : i32
    %c0_i32_0 = arith.constant 0 : i32
    %c0_i32_1 = arith.constant 0 : i32
    return %c0_i32, %c0_i32_0 : i32, i32
  }
  func.func @transform_10(%arg0: i32) -> (i32, i32) {
    %c0_i32 = arith.constant 0 : i32
    %c0_i32_0 = arith.constant 0 : i32
    %c0_i32_1 = arith.constant 0 : i32
    return %c0_i32, %c0_i32_0 : i32, i32
  }
  func.func @transform_11(%arg0: i32) -> (i32, i32) {
    %c0_i32 = arith.constant 0 : i32
    %c0_i32_0 = arith.constant 0 : i32
    %c0_i32_1 = arith.constant 0 : i32
    return %c0_i32, %c0_i32_0 : i32, i32
  }
  func.func @transform_12(%arg0: i32) -> (i32, i32) {
    %c0_i32 = arith.constant 0 : i32
    %c0_i32_0 = arith.constant 0 : i32
    %c0_i32_1 = arith.constant 0 : i32
    return %c0_i32, %c0_i32_0 : i32, i32
  }
  func.func @transform_13(%arg0: i32) -> (i32, i32, i32, i32) {
    %c0_i32 = arith.constant 0 : i32
    %c0_i32_0 = arith.constant 0 : i32
    %c0_i32_1 = arith.constant 0 : i32
    %c0_i32_2 = arith.constant 0 : i32
    return %arg0, %c0_i32, %c0_i32_0, %c0_i32_1 : i32, i32, i32, i32
  }
}

</mosaic_0001>

<bundles_post_ra>
// kernel: t3_forward.1
= control target key start
LH: loop header
LB: loop body
LE: loop exit
PB: predicated region body
PF: predicated region fallthrough
CT: control target
= control target key end

     0   :  { %s1276_s25 = smov 0   ;;  %s1493_s0 = inlined_call_operand.vmem [shape: f32[2,4,256], index: 0, kind: input, shape index: {}]   ;;  %s1494_s1 = inlined_call_operand.vmem [shape: f32[8,36], index: 1, kind: input, shape index: {}]   ;;  %s1495_s2 = inlined_call_operand.vmem [shape: f32[8,72], index: 2, kind: input, shape index: {}]   ;;  %s1496_s3 = inlined_call_operand.vmem [shape: f32[8,4], index: 3, kind: input, shape index: {}]   ;;  %s1497_s4 = inlined_call_operand.vmem [shape: f32[8,1], index: 4, kind: input, shape index: {}]   ;;  %s1498_s5 = inlined_call_operand.vmem [shape: f32[8,1], index: 5, kind: input, shape index: {}]   ;;  %s1499_s6 = inlined_call_operand.vmem [shape: f32[8,1], index: 6, kind: input, shape index: {}]   ;;  %s1500_s7 = inlined_call_operand.vmem [shape: f32[8,1], index: 7, kind: input, shape index: {}]   ;;  %s1501_s8 = inlined_call_operand.vmem [shape: f32[8,1], index: 8, kind: input, shape index: {}]   ;;  %s1502_s9 = inlined_call_operand.vmem [shape: f32[8,1], index: 9, kind: input, shape index: {}]   ;;  %s1503_s10 = inlined_call_operand.vmem [shape: f32[2,256], index: 10, kind: input, shape index: {}]   ;;  %s1504_s11 = inlined_call_operand.vmem [shape: f32[16,8], index: 11, kind: input, shape index: {}]   ;;  %s1505_s12 = inlined_call_operand.vmem [shape: f32[16,8], index: 12, kind: input, shape index: {}]   ;;  %s1506_s13 = inlined_call_operand.vmem [shape: f32[2,8,8,8], index: 13, kind: output, shape index: {}]  }
   0x1 LB: > { %s1107_s26 = sadd.s32 4294967295, %s1192_s25   ;;  %p1111_p0 = scmp.ge.s32.totalorder %s1192_s25, 1  ;;  %s1192_s25 = sphi %s1276_s25, %s23_s25  }
   0x2   : > { %p387_p1 = scmp.lt.s32.totalorder %s1192_s25, 3 }
   0x4   : > { %p388_p2 = pnand %p1111_p0, %p387_p1 }
   0x5   : > { %p431_p3 = scmp.lt.s32.totalorder (!%p388_p2), %s1107_s26, 1  ;;  %s1194_s14 = smov (!%p388_p2), 15  }
   0x6   : > { %391 = sbr.rel (%p388_p2) target bundleno = 1037 (0x40d), region = 72  ;;  %s1195_s15 = smov (!%p388_p2), 1  }
   0x7   : > { %s1196_s16 = smov (!%p388_p2), 127   ;;  %s1197_s17 = smov (!%p388_p2), 113  }
   0x8   : > { %s1198_s18 = smov (!%p388_p2), 16   ;;  %s1199_s19 = smov (!%p388_p2), 112  }
   0x9   : > { %s1200_s20 = smov (!%p388_p2), 17   ;;  %s1201_s21 = smov (!%p388_p2), 111  }
   0xa   : > { %s1205_s24 = smov (!%p388_p2), 32  }
   0xb   : > { %s1508_s26 = smov (!%p431_p3, %s1107_s26), 1  ;;  %v658_v27 = vld [vmem:[%s1498_s5] sm:$0xff]  ;;  %v1202_v29 = vmov 0   ;;  %vm484_vm0 = vcmask 121856   ;;  %vm504_vm1 = vcmask 7168   ;;  %vm518_vm2 = vcmask 1039360  }
   0xc   : > { %s1147_s27 = sshll.u32 %s1508_s26, 3  ;;  %v650_v28 = vld [vmem:[%s1497_s4] sm:$0xff]  ;;  %1184 = vset.pattern.permute.xlu0 %v1202_v29  ;;  %1183 = vset.pattern.permute.xlu2 %v1202_v29  ;;  %vm532_vm3 = vcmask 924672   ;;  %vm546_vm4 = vcmask 916480   ;;  %vm452_vm5 = vcmask 138240   ;;  %vm557_vm6 = vcmask 908288  }
   0xd   : > { %s435_s30 = scalar_lea.vmem %s1493_s0, %s1147_s27  ;;  %1185 = vset.pattern.permute.xlu1 %v1202_v29  ;;  %v442_v31 = vld [vmem:[%s1503_s10] sm:$0xf]  ;;  %vm473_vm7 = vcmask 130048   ;;  %vm591_vm8 = vcmask 1043456   ;;  %vm600_vm9 = vcmask 293888   ;;  %vm833_vm10 = vcmask 31744  }
   0xe   : > { %v441_v0 = vld [vmem:[%s435_s30] sm:$0xff]  ;;  %v458_v33 = vperm.slane %v442_v31, 0  ;;  %v459_v34 = vperm.slane %v442_v31, 2  ;;  %v489_v36 = vperm.slane %v442_v31, 1  ;;  %v490_v37 = vperm.slane %v442_v31, 3  ;;  %vm1120_vm11 = vmneg %vm473_vm7  ;;  %s1148_s27 = sshll.u32 %s1508_s26, 6 }
   0xf   : > { %445 = vst [vmem:[#allocation1] ss:$2 sm:$0xff] %v441_v0  ;;  %vm747_vm12 = vcmask 588800   ;;  %s1466_s30 = scalar_lea.vmem %s1506_s13, %s1148_s27  ;;  %vm1043_vm13 = vcmask 64512  }
  0x10   : > { %v1317_v39 = vperm.slane %v458_v33, 0  ;;  %v1319_v40 = vperm.slane %v459_v34, 0  ;;  %v1322_v44 = vperm.slane %v489_v36, 1  ;;  %v1324_v45 = vperm.slane %v490_v37, 1 }
  0x16   : > { %v446_v1 = vld.sshfl [vmem:[#allocation1] sm:$0xff pattern:$0x75316420]  ;;  %v447_v2 = vld.sshfl [vmem:[#allocation1 + $0x8] sm:$0xff pattern:$0x75316420] }
  0x17   : > { %466 = vst [vmem:[#allocation1] ss:$2 sm:$0xff] %v441_v0 }
  0x1e   : > { %v467_v3 = vld.sshfl [vmem:[#allocation1] sm:$0xff pattern:$0x75316420]  ;;  %v468_v4 = vld.sshfl [vmem:[#allocation1 + $0x8] sm:$0xff pattern:$0x75316420] }
  0x1f   : > { %477 = vst [vmem:[#allocation1] ss:$2 sm:$0xff] %v441_v0  ;;  %v1178_v13 = vpack.i.bf16 %v468_v4, %v467_v3 }
  0x26   : > { %v479_v5 = vld.sshfl [vmem:[#allocation1 + $0x8] sm:$0xff pattern:$0x75316420]  ;;  %v478_v6 = vld.sshfl [vmem:[#allocation1] sm:$0xff pattern:$0x75316420] }
  0x27   : > { %482 = vrot.lane.b32.xlu1 %v479_v5, %s1194_s14  ;;  %497 = vst [vmem:[#allocation1] ss:$2 sm:$0xff] %v441_v0  ;;  %480 = vrot.lane.b32.xlu0 %v478_v6, %s1194_s14 }
  0x2e   : > { %v498_v7 = vld.sshfl [vmem:[#allocation1] sm:$0xff pattern:$0x75316420]  ;;  %v499_v8 = vld.sshfl [vmem:[#allocation1 + $0x8] sm:$0xff pattern:$0x75316420] }
  0x2f   : > { %500 = vrot.lane.b32.xlu1 %v498_v7, %s1195_s15  ;;  %511 = vst [vmem:[#allocation1] ss:$2 sm:$0xff] %v441_v0  ;;  %502 = vrot.lane.b32.xlu2 %v499_v8, %s1195_s15 }
  0x36   : > { %v513_v9 = vld.sshfl [vmem:[#allocation1 + $0x8] sm:$0xff pattern:$0x75316420]  ;;  %v512_v10 = vld.sshfl [vmem:[#allocation1] sm:$0xff pattern:$0x75316420] }
  0x37   : > { %514 = vrot.lane.b32.xlu1 %v512_v10, %s1196_s16  ;;  %525 = vst [vmem:[#allocation1] ss:$2 sm:$0xff] %v441_v0 }
  0x3e   : > { %v526_v11 = vld.sshfl [vmem:[#allocation1] sm:$0xff pattern:$0x75316420]  ;;  %v527_v12 = vld.sshfl [vmem:[#allocation1 + $0x8] sm:$0xff pattern:$0x75316420] }
  0x3f   : > { %539 = vst [vmem:[#allocation1] ss:$2 sm:$0xff] %v441_v0  ;;  %516 = vrot.lane.b32.xlu1 %v513_v9, %s1196_s16  ;;  %528 = vrot.lane.b32.xlu2 %v526_v11, %s1197_s17 }
  0x46   : > { %v540_v14 = vld.sshfl [vmem:[#allocation1] sm:$0xff pattern:$0x75316420]  ;;  %v541_v15 = vld.sshfl [vmem:[#allocation1 + $0x8] sm:$0xff pattern:$0x75316420] }
  0x47   : > { %v1173_v16 = vpack.i.bf16 %v541_v15, %v540_v14  ;;  %550 = vst [vmem:[#allocation1] ss:$2 sm:$0xff] %v441_v0  ;;  %1179 = vrot.lane.b32.xlu1 %v1178_v13, %s1198_s18  ;;  %530 = vrot.lane.b32.xlu2 %v527_v12, %s1197_s17 }
  0x49   : > { %1174 = vrot.lane.b32.xlu0 %v1173_v16, %s1199_s19 }
  0x4e   : > { %v551_v17 = vld.sshfl [vmem:[#allocation1] sm:$0xff pattern:$0x75316420]  ;;  %v552_v18 = vld.sshfl [vmem:[#allocation1 + $0x8] sm:$0xff pattern:$0x75316420] }
  0x4f   : > { %575 = vst [vmem:[#allocation1] ss:$2 sm:$0xff] %v441_v0  ;;  %448 = vrot.lane.b32.xlu2 %v446_v1, %s1200_s20 }
  0x51   : > { %553 = vrot.lane.b32.xlu0 %v551_v17, %s1201_s21 }
  0x56   : > { %v1304_v22 = vld.sshfl [vmem:[#allocation1] sm:$0xff pattern:$0x75316420]  ;;  %v1306_v23 = vld.sshfl [vmem:[#allocation1 + $0x8] sm:$0xff pattern:$0x75316420] }
  0x57   : > { %830 = vst [vmem:[#allocation1] ss:$2 sm:$0xff] %v441_v0  ;;  %653 = vperm.xlu2 %1183, %v650_v28  }
  0x59   : > { %555 = vrot.lane.b32.xlu0 %v552_v18, %s1201_s21 }
  0x61   : > { %450 = vrot.lane.b32.xlu0 %v447_v2, %s1200_s20 }
  0x69   : > { %661 = vperm.xlu0 %1184, %v658_v27  }
  0x89   : > { %v503_v20 = vpop.permute.xlu2 %502 }
  0x99   : > { %v483_v19 = vpop.permute.xlu1 %482  ;;  %v481_v24 = vpop.permute.xlu0 %480 }
  0x9a   : > { %v529_v26 = vpop.permute.xlu2 %528  ;;  %v485_v46 = vsel %vm484_vm0, %v481_v24, %v483_v19  ;;  %v488_v49 = vsel %vm484_vm0, 0.0, %v481_v24 }
  0x9b   : > { %v495_v10 = vmul.f32 %v1322_v44, %v488_v49  ;;  %v496_v15 = vmul.f32 %v1324_v45, %v485_v46  ;;  %v791_v46 = vld [vmem:[%s1499_s6] sm:$0xff] }
  0xa1   : > { %v501_v21 = vpop.permute.xlu1 %500 }
  0xa2   : > { %v531_v35 = vpop.permute.xlu2 %530  ;;  %v508_v41 = vsel %vm504_vm1, 0.0, %v501_v21  ;;  %v505_v48 = vsel %vm504_vm1, %v501_v21, %v503_v20 }
  0xa3   : > { %v509_v52 = vmul.f32 %v508_v41, %v1317_v39  ;;  %v533_v53 = vsel %vm532_vm3, %v529_v26, %v531_v35  ;;  %v536_v54 = vsel %vm532_vm3, %v531_v35, 0.0  ;;  %v510_v59 = vmul.f32 %v505_v48, %v1319_v40 }
  0xa4   : > { %v537_v62 = vmul.f32 %v533_v53, %v1317_v39  ;;  %v538_v63 = vmul.f32 %v536_v54, %v1319_v40 }
  0xa5   : > { %v571_v13 = vrot.slane %v509_v52, 4  ;;  %v572_v14 = vrot.slane %v510_v59, 4  ;;  %v832_v59 = vld.sshfl [vmem:[#allocation1 + $0x8] sm:$0xff pattern:$0x75316420] }
  0xa7   : > { %v594_v28 = vsel %vm591_vm8, %v495_v10, %v571_v13  ;;  %v595_v29 = vsel %vm591_vm8, %v496_v15, %v572_v14 }
  0xa9   : > { %v515_v25 = vpop.permute.xlu1 %514 }
  0xaa   : > { %v449_v55 = vpop.permute.xlu2 %448 }
  0xab   : > { %v456_v2 = vsel %vm452_vm5, 0.0, %v449_v55 }
  0xac   : > { %v464_v16 = vmul.f32 %v1317_v39, %v456_v2 }
  0xb1   : > { %v517_v32 = vpop.permute.xlu1 %516 }
  0xb2   : > { %v519_v50 = vsel %vm518_vm2, %v515_v25, %v517_v32  ;;  %v522_v51 = vsel %vm518_vm2, %v517_v32, 0.0  ;;  %v654_v32 = vpop.permute.xlu2 %653 }
  0xb3   : > { %v523_v60 = vmul.f32 %v519_v50, %v1322_v44  ;;  %v524_v61 = vmul.f32 %v522_v51, %v1324_v45 }
  0xb5   : > { %v582_v11 = vrot.slane %v523_v60, 4  ;;  %v583_v12 = vrot.slane %v524_v61, 4  ;;  %v829_v61 = vld [vmem:[%s1496_s3] sm:$0xff] }
  0xb7   : > { %v596_v21 = vsel %vm591_vm8, %v1304_v22, %v582_v11  ;;  %v597_v24 = vsel %vm591_vm8, %v1306_v23, %v583_v12  ;;  %v443_v22 = vld [vmem:[%s1494_s1] sm:$0xff] }
  0xb9   : > { %v1180_v47 = vpop.permute.xlu1 %1179 }
  0xba   : > { %v1181_v57 = vunpack.i.l.bf16 %v1180_v47  ;;  %v1182_v1 = vunpack.i.h.bf16 %v1180_v47 }
  0xbb   : > { %v1175_v30 = vpop.permute.xlu0 %1174 }
  0xbc   : > { %v1177_v42 = vunpack.i.h.bf16 %v1175_v30  ;;  %v1176_v43 = vunpack.i.l.bf16 %v1175_v30  ;;  %v476_v9 = vsel %vm473_vm7, 0.0, %v1181_v57  ;;  %v474_v20 = vsel %vm473_vm7, %v1181_v57, %v1182_v1 }
  0xbd   : > { %v565_v17 = vrot.slane %v476_v9, 4  ;;  %v566_v26 = vrot.slane %v474_v20, 4  ;;  %v881_v9 = vld [vmem:[%s1501_s8] sm:$0xff] }
  0xbe   : > { %v549_v56 = vsel %vm546_vm4, %v1177_v42, 0.0  ;;  %v547_v58 = vsel %vm546_vm4, %v1176_v43, %v1177_v42 }
  0xbf   : > { %v588_v3 = vrot.slane %v549_v56, 4  ;;  %v587_v6 = vrot.slane %v547_v58, 4  ;;  %v592_v30 = vsel %vm591_vm8, %v464_v16, %v565_v17  ;;  %v831_v58 = vld.sshfl [vmem:[#allocation1] sm:$0xff pattern:$0x75316420] }
  0xc1   : > { %v598_v18 = vsel %vm591_vm8, %v537_v62, %v587_v6  ;;  %v599_v19 = vsel %vm591_vm8, %v538_v63, %v588_v3  ;;  %v799_v62 = vld [vmem:[%s1500_s7] sm:$0xff] }
  0xc3   : > { %v554_v38 = vpop.permute.xlu0 %553 }
  0xcb   : > { %v556_v0 = vpop.permute.xlu0 %555 }
  0xcc   : > { %v558_v4 = vsel %vm557_vm6, %v554_v38, %v556_v0  ;;  %v561_v5 = vsel %vm557_vm6, %v556_v0, 0.0 }
  0xcd   : > { %v562_v7 = vmul.f32 %v558_v4, %v1322_v44  ;;  %v563_v8 = vmul.f32 %v561_v5, %v1324_v45 }
  0xcf   : > { %1116 = vmatpush.msk.msra.mxu0 %vm591_vm8, %v562_v7  ;;  %1118 = vmatpush.msk.msra.mxu1 %vm591_vm8, %v563_v8 }
  0xd1   : > { %622 = vmatpush.msra.mxu0 %v598_v18  ;;  %642 = vmatpush.msra.mxu1 %v599_v19 }
  0xd3   : > { %v451_v25 = vpop.permute.xlu0 %450  ;;  %623 = vmatpush.msra.mxu0 %v596_v21  ;;  %643 = vmatpush.msra.mxu1 %v597_v24 }
  0xd4   : > { %v453_v27 = vsel %vm452_vm5, %v449_v55, %v451_v25 }
  0xd5   : > { %v465_v31 = vmul.f32 %v1319_v40, %v453_v27  ;;  %624 = vmatpush.msra.mxu0 %v594_v28  ;;  %644 = vmatpush.msra.mxu1 %v595_v29 }
  0xd7   : > { %625 = vmatpush.msra.mxu0 %v592_v30  ;;  %v593_v23 = vsel %vm591_vm8, %v465_v31, %v566_v26  ;;  %v668_v30 = vld [vmem:[%s1495_s2] sm:$0xff] }
  0xd8   : > { %1117 = vmatmul.msk.f32.vlgmr.msra.gmra.mxu0 %vm600_vm9, %v443_v22  ;;  %645 = vmatpush.msra.mxu1 %v593_v23 }
  0xd9   : > { %1119 = vmatmul.msk.f32.vlgmr.msra.gmra.mxu1 %vm600_vm9, %v443_v22  ;;  %1125 = vmatpush.msk.msrb.mxu0 %vm591_vm8, %v831_v58 }
  0xda   : > { %1127 = vmatpush.msk.msrb.mxu1 %vm591_vm8, %v832_v59 }
  0xdb   : > { %v662_v34 = vpop.permute.xlu0 %661 }
  0xe0   : > { %1126 = vmatmul.msk.f32.vlgmr.msrb.gmra.mxu0 %vm833_vm10, %v829_v61 }
  0xe1   : > { %1128 = vmatmul.msk.f32.vlgmr.msrb.gmra.mxu1 %vm833_vm10, %v829_v61 }
 0x155   : > { %v627_v33 = vpop.f32.mrf.mxu0 }
 0x156   : > { %v656_v35 = vmul.f32 %v654_v32, %v627_v33  ;;  %v647_v36 = vpop.f32.mrf.mxu1 }
 0x157   : > { %v657_v37 = vmul.f32 %v654_v32, %v647_v36  ;;  %v926_v36 = vld [vmem:[%s1504_s11 + $0x8] sm:$0xff] }
 0x158   : > { %v664_v38 = vadd.f32 %v662_v34, %v656_v35  ;;  %1016 = vmatpush.msra.mxu1 %v926_v36 }
 0x159   : > { %v665_v41 = vadd.f32 %v662_v34, %v657_v37  ;;  %v925_v37 = vld [vmem:[%s1504_s11] sm:$0xff] }
 0x15a   : > { %v666_v42 = vmax.f32 %v664_v38, 0.0  ;;  %1017 = vmatpush.msra.mxu1 %v925_v37  ;;  %v928_v38 = vld [vmem:[%s1505_s12 + $0x8] sm:$0xff] }
 0x15b   : > { %v667_v43 = vmax.f32 %v665_v41, 0.0  ;;  %959 = vmatpush.msra.mxu0 %v928_v38  ;;  %v927_v41 = vld [vmem:[%s1505_s12] sm:$0xff] }
 0x15c   : > { %729 = vrot.lane.b32.xlu0 %v666_v42, %s1199_s19  ;;  %737 = vrot.lane.b32.xlu1 %v666_v42, %s1201_s21 }
 0x15d   : > { %739 = vrot.lane.b32.xlu2 %v667_v43, %s1201_s21  ;;  %960 = vmatpush.msra.mxu0 %v927_v41 }
 0x164   : > { %711 = vrot.lane.b32.xlu0 %v667_v43, %s1196_s16  ;;  %719 = vrot.lane.b32.xlu1 %v666_v42, %s1197_s17 }
 0x165   : > { %721 = vrot.lane.b32.xlu2 %v667_v43, %s1197_s17  ;;  %s1203_s17 = smov 64  }
 0x16c   : > { %689 = vrot.lane.b32.xlu0 %v666_v42, %s1194_s14  ;;  %731 = vrot.lane.b32.xlu1 %v667_v43, %s1199_s19 }
 0x16d   : > { %709 = vrot.lane.b32.xlu2 %v666_v42, %s1196_s16 }
 0x174   : > { %673 = vrot.lane.b32.xlu0 %v667_v43, %s1200_s20  ;;  %699 = vrot.lane.b32.xlu1 %v666_v42, %s1195_s15 }
 0x175   : > { %701 = vrot.lane.b32.xlu2 %v667_v43, %s1195_s15 }
 0x17c   : > { %794 = vperm.xlu0 %1184, %v791_v46   ;;  %691 = vrot.lane.b32.xlu1 %v667_v43, %s1194_s14 }
 0x17d   : > { %671 = vrot.lane.b32.xlu2 %v666_v42, %s1200_s20  ;;  %s1204_s20 = smov 96  }
 0x184   : > { %681 = vrot.lane.b32.xlu1 %v666_v42, %s1198_s18 }
 0x185   : > { %683 = vrot.lane.b32.xlu2 %v667_v43, %s1198_s18 }
 0x18c   : > { %802 = vperm.xlu1 %1185, %v799_v62  }
 0x194   : > { %884 = vperm.xlu1 %1185, %v881_v9  }
 0x1b7   : > { %v740_v47 = vpop.permute.xlu2 %739 }
 0x1b8   : > { %v744_v48 = vsel %vm557_vm6, %v740_v47, 0.0 }
 0x1b9   : > { %v746_v49 = vmul.f32 %v744_v48, %v1324_v45 }
 0x1bb   : > { %778 = vmatpush.msra.mxu3 %v746_v49 }
 0x1bf   : > { %v722_v50 = vpop.permute.xlu2 %721 }
 0x1c0   : > { %v726_v60 = vsel %vm532_vm3, %v722_v50, 0.0 }
 0x1c1   : > { %v728_v4 = vmul.f32 %v726_v60, %v1319_v40 }
 0x1c7   : > { %v710_v56 = vpop.permute.xlu2 %709 }
 0x1ce   : > { %v738_v51 = vpop.permute.xlu1 %737  ;;  %v730_v53 = vpop.permute.xlu0 %729 }
 0x1cf   : > { %v741_v52 = vsel %vm557_vm6, %v738_v51, %v740_v47  ;;  %v702_v7 = vpop.permute.xlu2 %701 }
 0x1d0   : > { %v745_v54 = vmul.f32 %v741_v52, %v1322_v44 }
 0x1d2   : > { %758 = vmatpush.msra.mxu2 %v745_v54 }
 0x1d6   : > { %v720_v55 = vpop.permute.xlu1 %719  ;;  %v712_v57 = vpop.permute.xlu0 %711 }
 0x1d7   : > { %v723_v63 = vsel %vm532_vm3, %v720_v55, %v722_v50  ;;  %v716_v0 = vsel %vm518_vm2, %v712_v57, 0.0  ;;  %v713_v2 = vsel %vm518_vm2, %v710_v56, %v712_v57  ;;  %v672_v18 = vpop.permute.xlu2 %671  ;;  %v858_v56 = vpop.f32.mrf.mxu0 }
 0x1d8   : > { %v727_v5 = vmul.f32 %v723_v63, %v1317_v39  ;;  %v718_v6 = vmul.f32 %v716_v0, %v1324_v45  ;;  %v717_v8 = vmul.f32 %v713_v2, %v1322_v44  ;;  %v678_v25 = vsel %vm452_vm5, 0.0, %v672_v18  ;;  %v878_v57 = vpop.f32.mrf.mxu1 }
 0x1d9   : > { %v679_v29 = vmul.f32 %v678_v25, %v1317_v39 }
 0x1de   : > { %v732_v1 = vpop.permute.xlu1 %731  ;;  %v690_v10 = vpop.permute.xlu0 %689 }
 0x1df   : > { %1123 = vmatpush.msk.msra.mxu3 %vm546_vm4, %v732_v1  ;;  %v733_v3 = vsel %vm546_vm4, %v730_v53, %v732_v1  ;;  %v696_v12 = vsel %vm484_vm0, 0.0, %v690_v10  ;;  %v684_v27 = vpop.permute.xlu2 %683 }
 0x1e0   : > { %759 = vmatpush.msra.mxu2 %v733_v3  ;;  %v697_v17 = vmul.f32 %v696_v12, %v1322_v44 }
 0x1e1   : > { %780 = vmatpush.msra.mxu3 %v728_v4 }
 0x1e2   : > { %760 = vmatpush.msra.mxu2 %v727_v5 }
 0x1e3   : > { %781 = vmatpush.msra.mxu3 %v718_v6 }
 0x1e4   : > { %761 = vmatpush.msra.mxu2 %v717_v8 }
 0x1e5   : > { %782 = vmatpush.msra.mxu3 %v667_v43 }
 0x1e6   : > { %762 = vmatpush.msra.mxu2 %v666_v42  ;;  %v700_v11 = vpop.permute.xlu1 %699  ;;  %v674_v24 = vpop.permute.xlu0 %673 }
 0x1e7   : > { %v703_v13 = vsel %vm504_vm1, %v700_v11, %v702_v7  ;;  %v706_v14 = vsel %vm504_vm1, 0.0, %v700_v11  ;;  %v675_v26 = vsel %vm452_vm5, %v672_v18, %v674_v24 }
 0x1e8   : > { %v707_v15 = vmul.f32 %v706_v14, %v1317_v39  ;;  %v708_v16 = vmul.f32 %v703_v13, %v1319_v40 }
 0x1ea   : > { %763 = vmatpush.msra.mxu2 %v707_v15  ;;  %783 = vmatpush.msra.mxu3 %v708_v16 }
 0x1ec   : > { %764 = vmatpush.msra.mxu2 %v697_v17 }
 0x1ee   : > { %v692_v19 = vpop.permute.xlu1 %691  ;;  %v795_v31 = vpop.permute.xlu0 %794 }
 0x1ef   : > { %v693_v20 = vsel %vm484_vm0, %v690_v10, %v692_v19 }
 0x1f0   : > { %v698_v21 = vmul.f32 %v693_v20, %v1324_v45  ;;  %v680_v45 = vmul.f32 %v675_v26, %v1319_v40  ;;  %v889_v40 = vld [vmem:[%s1502_s9] sm:$0xff] }
 0x1f2   : > { %784 = vmatpush.msra.mxu3 %v698_v21 }
 0x1f6   : > { %v682_v28 = vpop.permute.xlu1 %681 }
 0x1f7   : > { %1121 = vmatpush.msk.msra.mxu2 %vm1120_vm11, %v682_v28  ;;  %v685_v44 = vsel %vm473_vm7, %v682_v28, %v684_v27 }
 0x1f8   : > { %785 = vmatpush.msra.mxu3 %v685_v44 }
 0x1f9   : > { %766 = vmatpush.msra.mxu2 %v679_v29 }
 0x1fa   : > { %1122 = vmatmul.msk.f32.vlgmr.msra.gmra.mxu2 %vm747_vm12, %v668_v30  ;;  %786 = vmatpush.msra.mxu3 %v680_v45 }
 0x1fb   : > { %1124 = vmatmul.msk.f32.vlgmr.msra.gmra.mxu3 %vm747_vm12, %v668_v30  ;;  %1149 = vmatpush.msrb.mxu2 %v928_v38 }
 0x1fc   : > { %1151 = vmatpush.msrb.mxu3 %v926_v36 }
 0x1fd   : > { %1150 = vmatpush.msrb.mxu2 %v927_v41 }
 0x1fe   : > { %v803_v33 = vpop.permute.xlu1 %802  ;;  %1152 = vmatpush.msrb.mxu3 %v925_v37 }
 0x206   : > { %v885_v43 = vpop.permute.xlu1 %884 }
 0x207   : > { %v887_v59 = vmul.f32 %v885_v43, %v858_v56  ;;  %v888_v60 = vmul.f32 %v885_v43, %v878_v57 }
 0x27d   : > { %v768_v22 = vpop.f32.mrf.mxu2 }
 0x27e   : > { %v797_v23 = vmul.f32 %v795_v31, %v768_v22  ;;  %v788_v32 = vpop.f32.mrf.mxu3 }
 0x27f   : > { %v798_v34 = vmul.f32 %v795_v31, %v788_v32 }
 0x280   : > { %v805_v35 = vadd.f32 %v803_v33, %v797_v23 }
 0x281   : > { %v806_v39 = vadd.f32 %v803_v33, %v798_v34 }
 0x282   : > { %819 = vrot.lane.b32.xlu1 %v805_v35, %s1199_s19  ;;  %809 = vrot.lane.b32.xlu2 %v805_v35, %s1198_s18 }
 0x283   : > { %811 = vrot.lane.b32.xlu0 %v806_v39, %s1198_s18 }
 0x28a   : > { %821 = vrot.lane.b32.xlu2 %v806_v39, %s1199_s19 }
 0x28b   : > { %892 = vperm.xlu0 %1184, %v889_v40  }
 0x2dc   : > { %v810_v42 = vpop.permute.xlu2 %809 }
 0x2dd   : > { %v816_v46 = vsel %vm473_vm7, 0.0, %v810_v42 }
 0x2de   : > { %v817_v47 = vadd.f32 %v816_v46, %v805_v35 }
 0x2e4   : > { %v822_v48 = vpop.permute.xlu2 %821 }
 0x2e5   : > { %v826_v55 = vsel %vm546_vm4, %v822_v48, 0.0 }
 0x2f4   : > { %v820_v49 = vpop.permute.xlu1 %819 }
 0x2f5   : > { %v823_v50 = vsel %vm546_vm4, %v820_v49, %v822_v48  ;;  %v812_v51 = vpop.permute.xlu0 %811 }
 0x2f6   : > { %v827_v52 = vadd.f32 %v823_v50, %v817_v47  ;;  %v813_v53 = vsel %vm473_vm7, %v810_v42, %v812_v51 }
 0x2f7   : > { %v818_v54 = vadd.f32 %v813_v53, %v806_v39 }
 0x2f8   : > { %1137 = vmatmul.msk.f32.vlgmr.msra.gmra.mxu1 %vm473_vm7, %v827_v52 }
 0x2f9   : > { %v828_v58 = vadd.f32 %v826_v55, %v818_v54 }
 0x2fb   : > { %1141 = vmatmul.msk.f32.vlgmr.msrb.gmra.mxu3 %vm473_vm7, %v828_v58 }
 0x2fd   : > { %v893_v61 = vpop.permute.xlu0 %892 }
 0x2fe   : > { %v895_v62 = vadd.f32 %v893_v61, %v887_v59  ;;  %v896_v63 = vadd.f32 %v893_v61, %v888_v60 }
 0x300   : > { %921 = vrot.lane.b32.xlu1 %v896_v63, %s1203_s17  ;;  %919 = vrot.lane.b32.xlu0 %v896_v63, %s1204_s20 }
 0x301   : > { %1133 = vmatmul.msk.f32.vlgmr.msrb.gmra.mxu2 %vm473_vm7, %v896_v63  ;;  %912 = vrot.lane.b32.xlu2 %v895_v62, %s1204_s20 }
 0x302   : > { %1129 = vmatmul.msk.f32.vlgmr.msra.gmra.mxu0 %vm473_vm7, %v895_v62 }
 0x308   : > { %907 = vrot.lane.b32.xlu0 %v828_v58, %s1203_s17  ;;  %898 = vrot.lane.b32.xlu1 %v827_v52, %s1204_s20 }
 0x309   : > { %905 = vrot.lane.b32.xlu2 %v828_v58, %s1204_s20 }
 0x310   : > { %914 = vrot.lane.b32.xlu0 %v895_v62, %s1203_s17  ;;  %909 = vrot.lane.b32.xlu1 %v828_v58, %s1205_s24 }
 0x311   : > { %900 = vrot.lane.b32.xlu2 %v827_v52, %s1203_s17 }
 0x318   : > { %902 = vrot.lane.b32.xlu0 %v827_v52, %s1205_s24  ;;  %916 = vrot.lane.b32.xlu1 %v895_v62, %s1205_s24 }
 0x319   : > { %923 = vrot.lane.b32.xlu2 %v896_v63, %s1205_s24 }
 0x35b   : > { %v913_v0 = vpop.permute.xlu2 %912 }
 0x35c   : > { %1130 = vmatmul.msk.f32.gmra.mxu0 %vm473_vm7, %v913_v0 }
 0x363   : > { %v906_v1 = vpop.permute.xlu2 %905 }
 0x364   : > { %1142 = vmatmul.msk.f32.gmra.mxu3 %vm473_vm7, %v906_v1 }
 0x36b   : > { %v901_v4 = vpop.permute.xlu2 %900 }
 0x372   : > { %v920_v2 = vpop.permute.xlu0 %919  ;;  %v922_v3 = vpop.permute.xlu1 %921 }
 0x373   : > { %1134 = vmatmul.msk.f32.gmra.mxu2 %vm473_vm7, %v920_v2  ;;  %v924_v10 = vpop.permute.xlu2 %923 }
 0x375   : > { %v1019_v7 = vpop.f32.mrf.mxu1 }
 0x37a   : > { %v908_v5 = vpop.permute.xlu0 %907  ;;  %v899_v6 = vpop.permute.xlu1 %898 }
 0x37b   : > { %1135 = vmatmul.msk.f32.gmra.mxu2 %vm473_vm7, %v922_v3  ;;  %1138 = vmatmul.msk.f32.gmra.mxu1 %vm473_vm7, %v899_v6 }
 0x37c   : > { %1143 = vmatmul.msk.f32.gmra.mxu3 %vm473_vm7, %v908_v5 }
 0x37e   : > { %v1031_v13 = vpop.f32.mrf.mxu3 }
 0x37f   : > { %v962_v8 = vpop.f32.mrf.mxu0 }
 0x380   : > { %v1020_v9 = vadd.f32 %v1019_v7, %v962_v8 }
 0x382   : > { %1044 = vst.msk [vmem:[%s1466_s30] sm:$0xff] %vm1043_vm13, %v1020_v9  ;;  %v915_v11 = vpop.permute.xlu0 %914  ;;  %v910_v12 = vpop.permute.xlu1 %909 }
 0x383   : > { %1131 = vmatmul.msk.f32.gmra.mxu0 %vm473_vm7, %v915_v11  ;;  %1136 = vmatmul.msk.f32.gmra.mxu2 %vm473_vm7, %v924_v10 }
 0x384   : > { %v974_v14 = vpop.f32.mrf.mxu2  ;;  %1139 = vmatmul.msk.f32.gmra.mxu1 %vm473_vm7, %v901_v4  ;;  %1144 = vmatmul.msk.f32.gmra.mxu3 %vm473_vm7, %v910_v12 }
 0x385   : > { %v1032_v15 = vadd.f32 %v1031_v13, %v974_v14 }
 0x387   : > { %1048 = vst.msk [vmem:[%s1466_s30 + $0x20] sm:$0xff] %vm1043_vm13, %v1032_v15 }
 0x38a   : > { %v903_v16 = vpop.permute.xlu0 %902  ;;  %v917_v17 = vpop.permute.xlu1 %916 }
 0x38b   : > { %1132 = vmatmul.msk.f32.gmra.mxu0 %vm473_vm7, %v917_v17 }
 0x38c   : > { %1140 = vmatmul.msk.f32.gmra.mxu1 %vm473_vm7, %v903_v16 }
 0x3d9   : > { %v965_v21 = vpop.f32.mrf.mxu0 }
 0x3e7   : > { %v1034_v18 = vpop.f32.mrf.mxu3 }
 0x3f6   : > { %v977_v19 = vpop.f32.mrf.mxu2 }
 0x3f7   : > { %v1035_v20 = vadd.f32 %v1034_v18, %v977_v19 }
 0x3f8   : > { %v1022_v24 = vpop.f32.mrf.mxu1 }
 0x3f9   : > { %1049 = vst.msk [vmem:[%s1466_s30 + $0x28] sm:$0xff] %vm1043_vm13, %v1035_v20  ;;  %v1023_v25 = vadd.f32 %v1022_v24, %v965_v21 }
 0x3fb   : > { %1045 = vst.msk [vmem:[%s1466_s30 + $0x8] sm:$0xff] %vm1043_vm13, %v1023_v25 }
 0x3fe   : > { %v980_v26 = vpop.f32.mrf.mxu2 }
 0x3ff   : > { %v1037_v27 = vpop.f32.mrf.mxu3 }
 0x400   : > { %v1038_v28 = vadd.f32 %v1037_v27, %v980_v26  ;;  %v968_v44 = vpop.f32.mrf.mxu0 }
 0x401   : > { %v1025_v29 = vpop.f32.mrf.mxu1 }
 0x402   : > { %1050 = vst.msk [vmem:[%s1466_s30 + $0x30] sm:$0xff] %vm1043_vm13, %v1038_v28  ;;  %v1026_v30 = vadd.f32 %v1025_v29, %v968_v44 }
 0x404   : > { %1046 = vst.msk [vmem:[%s1466_s30 + $0x10] sm:$0xff] %vm1043_vm13, %v1026_v30 }
 0x406   : > { %v983_v45 = vpop.f32.mrf.mxu2 }
 0x407   : > { %v1040_v31 = vpop.f32.mrf.mxu3 }
 0x408   : > { %v1041_v22 = vadd.f32 %v1040_v31, %v983_v45  ;;  %v971_v23 = vpop.f32.mrf.mxu0 }
 0x409   : > { %v1028_v32 = vpop.f32.mrf.mxu1 }
 0x40a   : > { %1051 = vst.msk [vmem:[%s1466_s30 + $0x38] sm:$0xff] %vm1043_vm13, %v1041_v22  ;;  %v1029_v33 = vadd.f32 %v1028_v32, %v971_v23 }
 0x40c   : > { %1047 = vst.msk [vmem:[%s1466_s30 + $0x18] sm:$0xff] %vm1043_vm13, %v1029_v33 }
 0x40d PF: > { %s23_s25 = sadd.s32 1, %s1192_s25  }
 0x40e   : > { %p20_p4 = scmp.ge.s32.totalorder %s23_s25, 4  }
 0x410   :  { %22 = sbr.rel (!%p20_p4) target bundleno = 1 (0x1), region = 102 }

</bundles_post_ra>
